<compile_context>
chip_gen: v6e
topology: v6e:2x2x1
jax: 0.10.0
libtpu: 0.0.40
codegen_flags: <defaults>
</compile_context>

<pallas_src>
import jax
import jax.numpy as jnp
from jax.experimental import pallas as pl
from jax.experimental.pallas import tpu as pltpu

TILE_LANES = 1024                 # 8 * 128 — wide lane-dense last dim
TILE_ROWS = 512                   # 512 x 1024 f32 = 2 MiB per tile
CHUNK = TILE_ROWS * TILE_LANES    # elements handled per grid step (524288)


def linear_kernel(x_ref, w_ref, b_ref, o_ref):
    # x_ref: (tile_rows, tile_lanes) in VMEM; w_ref/b_ref: (1,) f32 scalars in SMEM.
    # Linear(1, 1): y = x * w + b  (scalar scale + shift, VPU only).
    o_ref[...] = (x_ref[...] * w_ref[0] + b_ref[0]).astype(o_ref.dtype)


def _pallas_linear(x_slab, w, b, *, tile_rows, tile_lanes):
    rows, lanes = x_slab.shape
    assert rows % tile_rows == 0 and lanes == tile_lanes
    return pl.pallas_call(
        linear_kernel,
        out_shape=jax.ShapeDtypeStruct((rows, lanes), x_slab.dtype),
        grid_spec=pltpu.PrefetchScalarGridSpec(
            num_scalar_prefetch=0,
            grid=(rows // tile_rows,),
            in_specs=[
                pl.BlockSpec((tile_rows, tile_lanes), lambda i: (i, 0)),   # x tile
                pl.BlockSpec(memory_space=pltpu.MemorySpace.SMEM),         # weight
                pl.BlockSpec(memory_space=pltpu.MemorySpace.SMEM),         # bias
            ],
            out_specs=pl.BlockSpec((tile_rows, tile_lanes), lambda i: (i, 0)),
        ),
        compiler_params=pltpu.CompilerParams(
            dimension_semantics=("parallel",),
        ),
    )(x_slab, w, b)


def linear_forward(x, weight, bias, *, force_kernel=False):
    """x: (N, 1), weight: (1, 1), bias: (1,)  ->  (N, 1). Matches nn.Linear(1, 1)."""
    n, in_f = x.shape
    assert in_f == 1 and weight.shape == (1, 1) and bias.shape == (1,)

    w = weight.reshape(1).astype(jnp.float32)
    b = bias.reshape(1).astype(jnp.float32)
    x_flat = x.reshape(-1)

    main = (n // CHUNK) * CHUNK   # largest tile-aligned prefix

    if main == 0:
        if not force_kernel:
            # Below one full tile plain XLA is already at HBM roofline.
            return x * w[0] + b[0]
        # Forced tiny path (testing only): pad to a single minimal (8, 128) tile.
        rows, lanes = 8, 128
        x_slab = jnp.pad(x_flat, (0, rows * lanes - n)).reshape(rows, lanes)
        y_slab = _pallas_linear(x_slab, w, b, tile_rows=rows, tile_lanes=lanes)
        return y_slab.reshape(-1)[:n].reshape(n, 1)

    # Hot path: kernel over the aligned prefix (zero-pad-free reshape),
    # ragged tail (< CHUNK elements) via one fused XLA elementwise op.
    x_main = x_flat[:main].reshape(main // TILE_LANES, TILE_LANES)
    y_main = _pallas_linear(
        x_main, w, b, tile_rows=TILE_ROWS, tile_lanes=TILE_LANES
    ).reshape(-1)
    if main == n:
        return y_main.reshape(n, 1)
    y_tail = x_flat[main:] * w[0] + b[0]
    return jnp.concatenate([y_main, y_tail]).reshape(n, 1)


if __name__ == "__main__":
    key = jax.random.PRNGKey(0)
    kx, kw, kb, kx2 = jax.random.split(key, 4)

    # Deterministic parameters (same shapes as nn.Linear(1, 1)).
    weight = jax.random.uniform(kw, (1, 1), jnp.float32, minval=-1.0, maxval=1.0)
    bias = jax.random.uniform(kb, (1,), jnp.float32, minval=-1.0, maxval=1.0)

    # Small input consistent with Linear(in_features=1): batch of 8 samples.
    x_small = jax.random.normal(kx, (8, 1), jnp.float32)
    y_ref_small = x_small @ weight.T + bias

    # 1) Pallas kernel forced on the small batch (single minimal (8, 128) tile).
    y_small_k = linear_forward(x_small, weight, bias, force_kernel=True)
    jax.block_until_ready(y_small_k)
    assert y_small_k.shape == (8, 1)
    assert jnp.allclose(y_small_k, y_ref_small, atol=1e-6), "kernel mismatch (small)"

    # 2) Tiny-N dispatch path (plain XLA fallback).
    y_small = linear_forward(x_small, weight, bias)
    jax.block_until_ready(y_small)
    assert jnp.allclose(y_small, y_ref_small, atol=1e-6), "fallback mismatch"

    # 3) Larger batch exercising the multi-step pipelined grid (2 tiles of
    #    512x1024) plus the ragged XLA tail path (173 leftover elements).
    n_big = 2 * CHUNK + 173
    x_big = jax.random.normal(kx2, (n_big, 1), jnp.float32)
    y_big = linear_forward(x_big, weight, bias)
    jax.block_until_ready(y_big)
    assert jnp.allclose(y_big, x_big @ weight.T + bias, atol=1e-5), "kernel mismatch (big)"

    print("KERNEL_OK")
</pallas_src>

<mosaic_0001>
module attributes {stable_mosaic.version = 11 : i64} {
  func.func @linear_kernel(%arg0: i32, %arg1: memref<8x128xf32, #tpu.memory_space<vmem>>, %arg2: memref<1xf32, #tpu.memory_space<smem>>, %arg3: memref<1xf32, #tpu.memory_space<smem>>, %arg4: memref<8x128xf32, #tpu.memory_space<vmem>>) attributes {dimension_semantics = [#tpu.dimension_semantics<parallel>], iteration_bounds = array<i64: 1>, scalar_prefetch = 0 : i64, scratch_operands = 0 : i64, tpu.core_type = #tpu.core_type<tc>, window_params = [{transform_indices = @transform_0, window_bounds = array<i64: 8, 128>}, {transform_indices = @transform_1, window_bounds = array<i64: 1>}, {transform_indices = @transform_2, window_bounds = array<i64: 1>}, {transform_indices = @transform_3, window_bounds = array<i64: 8, 128>}]} {
    %c0 = arith.constant 0 : index
    %c0_0 = arith.constant 0 : index
    %0 = vector.load %arg1[%c0, %c0_0] : memref<8x128xf32, #tpu.memory_space<vmem>>, vector<8x128xf32>
    %c0_1 = arith.constant 0 : index
    %1 = memref.load %arg2[%c0_1] : memref<1xf32, #tpu.memory_space<smem>>
    %2 = vector.broadcast %1 : f32 to vector<8x128xf32>
    %3 = arith.mulf %0, %2 : vector<8x128xf32>
    %c0_2 = arith.constant 0 : index
    %4 = memref.load %arg3[%c0_2] : memref<1xf32, #tpu.memory_space<smem>>
    %5 = vector.broadcast %4 : f32 to vector<8x128xf32>
    %6 = arith.addf %3, %5 : vector<8x128xf32>
    %c0_3 = arith.constant 0 : index
    %c0_4 = arith.constant 0 : index
    %7 = vector.load %arg4[%c0_3, %c0_4] : memref<8x128xf32, #tpu.memory_space<vmem>>, vector<8x128xf32>
    tpu.vector_store %arg4[%c0_3, %c0_4], %6 {strides = array<i32>} : memref<8x128xf32, #tpu.memory_space<vmem>>, vector<8x128xf32>,
    return
  }
  func.func @transform_0(%arg0: i32) -> (i32, i32) {
    %c0_i32 = arith.constant 0 : i32
    %c0_i32_0 = arith.constant 0 : i32
    return %arg0, %c0_i32 : i32, i32
  }
  func.func @transform_1(%arg0: i32) -> i32 {
    %c0_i32 = arith.constant 0 : i32
    %c0_i32_0 = arith.constant 0 : i32
    return %c0_i32 : i32
  }
  func.func @transform_2(%arg0: i32) -> i32 {
    %c0_i32 = arith.constant 0 : i32
    %c0_i32_0 = arith.constant 0 : i32
    return %c0_i32 : i32
  }
  func.func @transform_3(%arg0: i32) -> (i32, i32) {
    %c0_i32 = arith.constant 0 : i32
    %c0_i32_0 = arith.constant 0 : i32
    return %arg0, %c0_i32 : i32, i32
  }
}

</mosaic_0001>

<bundles_post_ra>
// kernel: tpu_custom_call.1
= control target key start
LH: loop header
LB: loop body
LE: loop exit
PB: predicated region body
PF: predicated region fallthrough
CT: control target
= control target key end

     0   :  { %10 = vsyncpa [#allocation5], 0  ;;  %s132_s0 = inlined_call_operand.hbm [shape: f32[8,128], index: 0, kind: input, shape index: {}]   ;;  %s133_s1 = inlined_call_operand.<no memory space> [shape: f32[1], index: 1, kind: input, shape index: {}]   ;;  %s134_s2 = inlined_call_operand.<no memory space> [shape: f32[1], index: 2, kind: input, shape index: {}]   ;;  %s135_s3 = inlined_call_operand.hbm [shape: f32[8,128], index: 3, kind: output, shape index: {}]  }
   0x1   :  { %11 = vsyncpa [#allocation6], 0  ;;  %s98_s12 = smov [#allocation4]  }
   0x2   :  { %s18_s13 = sshll.u32 %s98_s12, 4  ;;  %s19_s13 = int_to_ptr.vmem [resolvable:$true] %s18_s13 }
   0x3   :  { %s62_s14 = scalar_lea.vmem %s19_s13, 128  ;;  %p67_p1 = scmp.lt.s32.totalorder %s19_s13, %s19_s13 }
   0x4   :  { %p63_p0 = scmp.ne.s32.totalorder %s19_s13, %s62_s14  ;;  %p68_p2 = scmp.lt.s32.totalorder %s62_s14, %s62_s14 }
   0x6   :  { %p69_p3 = por %p68_p2, %p67_p1 }
   0x8   :  { %p70_p4 = pnand %p69_p3, %p63_p0 }
   0xa   :  { %73 = shalt.err (!%p70_p4)
}
   0xb   :  { %21 = dma.hbm_to_vmem [thread:$0]  %s132_s0, 128, %s19_s13, [#allocation5]  }
   0xc   :  { %94 = dma.done.wait [#allocation5], 128  }
   0xd   :  { %95 = vsyncadd [#allocation5], 4294967168  ;;  %v31_v0 = vstv %s133_s1  ;;  %v29_v1 = vld [vmem:[#allocation4] sm:$0xff]  ;;  %v34_v2 = vstv %s134_s2  ;;  %s99_s21 = smov [#allocation7]  }
   0xe   :  { %s43_s22 = sshll.u32 %s99_s21, 4  ;;  %v32_v3 = vmul.f32 %v31_v0, %v29_v1  ;;  %s44_s22 = int_to_ptr.vmem [resolvable:$true] %s43_s22 }
   0xf   :  { %s74_s23 = scalar_lea.vmem %s44_s22, 128  ;;  %p79_p6 = scmp.lt.s32.totalorder %s44_s22, %s44_s22 }
  0x10   :  { %v35_v4 = vadd.f32 %v34_v2, %v32_v3  ;;  %p75_p5 = scmp.ne.s32.totalorder %s44_s22, %s74_s23  ;;  %p80_p7 = scmp.lt.s32.totalorder %s74_s23, %s74_s23 }
  0x12   :  { %36 = vst [vmem:[#allocation7] sm:$0xff] %v35_v4  ;;  %p81_p8 = por %p80_p7, %p79_p6 }
  0x14   :  { %p82_p9 = pnand %p81_p8, %p75_p5 }
  0x16   :  { %85 = shalt.err (!%p82_p9)
}
  0x17   :  { %46 = dma.vmem_to_hbm [thread:$0]  %s44_s22, 128, %s135_s3, [#allocation6]  }
  0x18   :  { %96 = dma.done.wait [#allocation6], 128  }
  0x19   :  { %97 = vsyncadd [#allocation6], 4294967168 }
  0x1a   :  { %50 = vsyncpa [#allocation5], 1 }
  0x1b   :  { %51 = vsyncpa [#allocation6], 1 }

</bundles_post_ra>
